<compile_context>
chip_gen: v7x
topology: tpu7x:2x2x1
jax: 0.10.0
libtpu: 0.0.40
codegen_flags: <defaults>
</compile_context>

<pallas_src>
import jax
import jax.numpy as jnp
from jax.experimental import pallas as pl
from jax.experimental.pallas import tpu as pltpu


# ---------------------------------------------------------------------------
# Kernel bodies
# ---------------------------------------------------------------------------

def foonet_resident_kernel(x_ref, w_ref, o_ref):
    """All L layers in one grid step; full weight stack resident in VMEM.

    x_ref: [TB, N]        batch tile
    w_ref: [L, N, N]      pre-transposed weights (layer, in, out)
    o_ref: [TB, N]
    """
    x = x_ref[...]
    num_layers = w_ref.shape[0]
    for l in range(num_layers):                 # static unroll (L small & fixed)
        # x @ W_t[l]: contraction of x's last axis with the weight's FIRST
        # axis -> pure MXU matmul, no in-kernel transpose / XLU work.
        y = jnp.dot(x, w_ref[l], preferred_element_type=jnp.float32)
        x = jnp.maximum(y, 0.0)                 # ReLU on the VPU, f32 (v5e-safe)
    o_ref[...] = x.astype(o_ref.dtype)


def foonet_streamed_kernel(x_ref, w_ref, o_ref, act_ref):
    """One layer per grid step (innermost 'arbitrary' axis); activation carried
    across layers in a VMEM scratch.  Each layer's weight DMA overlaps the
    previous layer's matmul via the normal BlockSpec pipeline.

    x_ref:   [TB, N]      batch tile (consumed only at l == 0)
    w_ref:   [1, N, N]    this layer's pre-transposed weight
    o_ref:   [TB, N]      written only at the last layer
    act_ref: [TB, N] f32  carried activation scratch
    """
    l = pl.program_id(1)

    @pl.when(l == 0)
    def _():
        act_ref[...] = x_ref[...].astype(jnp.float32)

    y = jnp.dot(act_ref[...], w_ref[0], preferred_element_type=jnp.float32)
    act_ref[...] = jnp.maximum(y, 0.0)

    @pl.when(l == pl.num_programs(1) - 1)
    def _():
        o_ref[...] = act_ref[...].astype(o_ref.dtype)


# ---------------------------------------------------------------------------
# Wrapper
# ---------------------------------------------------------------------------

def foonet_forward(x, weights, *, batch_tile=512, weights_dtype=None, path=None):
    """FooNet forward: x -> relu(x @ W_l.T), l = 0..L-1.

    x:       [B, N] float32
    weights: [L, N, N] in torch nn.Linear.weight layout ([out, in]).
    weights_dtype: optionally cast weights (e.g. jnp.bfloat16) once here.
    path:    None (auto) | "resident" | "streamed".
    """
    B, N = x.shape
    L = weights.shape[0]
    assert weights.shape == (L, N, N)

    # Pre-transpose once outside the kernel -> [L, N_in, N_out].
    w_t = jnp.swapaxes(weights, 1, 2)
    if weights_dtype is not None:
        w_t = w_t.astype(weights_dtype)
    w_itemsize = jnp.dtype(w_t.dtype).itemsize
    x_itemsize = jnp.dtype(x.dtype).itemsize

    # --- batch tiling: big tile + ceiling-divide grid (Pallas masks the tail) ---
    tb = min(batch_tile, B)
    if tb % 8 != 0:
        tb = B                      # tiny batch: full-extent block bypasses (8,128)
    grid_b = pl.cdiv(B, tb)

    # --- resident vs streamed weights (inputs are double-buffered by BlockSpec) ---
    resident_w_bytes = 2 * L * N * N * w_itemsize
    if path is None:
        path = "resident" if resident_w_bytes <= 16 * 1024 * 1024 else "streamed"

    act_bytes = 2 * tb * N * x_itemsize + 2 * tb * N * 4   # in + out, double-buffered

    cost = pl.CostEstimate(
        flops=2 * B * N * N * L,
        transcendentals=0,
        bytes_accessed=B * N * x_itemsize + L * N * N * w_itemsize + B * N * 4,
    )

    if path == "resident":
        kernel = foonet_resident_kernel
        grid = (grid_b,)
        in_specs = [
            pl.BlockSpec((tb, N), lambda i: (i, 0)),          # batch tile
            pl.BlockSpec((L, N, N), lambda i: (0, 0, 0)),     # weights stay resident
        ]
        out_specs = pl.BlockSpec((tb, N), lambda i: (i, 0))
        scratch_shapes = []
        dim_sem = ("parallel",)
        vmem_needed = act_bytes + resident_w_bytes
    else:
        kernel = foonet_streamed_kernel
        grid = (grid_b, L)                                    # L innermost, sequential
        in_specs = [
            pl.BlockSpec((tb, N), lambda i, l: (i, 0)),
            pl.BlockSpec((1, N, N), lambda i, l: (l, 0, 0)),  # stream one layer/step
        ]
        out_specs = pl.BlockSpec((tb, N), lambda i, l: (i, 0))
        scratch_shapes = [pltpu.VMEM((tb, N), jnp.float32)]   # carried activation
        dim_sem = ("parallel", "arbitrary")
        vmem_needed = act_bytes + 2 * N * N * w_itemsize + tb * N * 4

    # Raise the scoped-VMEM limit only when the defaults (16 MiB v5e /
    # 32 MiB v6e,v7x) could be too small; cap at v7x's 64 MiB physical VMEM.
    vmem_limit = None
    if vmem_needed > 12 * 1024 * 1024:
        vmem_limit = min(64 * 1024 * 1024, max(2 * vmem_needed, 16 * 1024 * 1024))

    return pl.pallas_call(
        kernel,
        out_shape=jax.ShapeDtypeStruct((B, N), jnp.float32),
        grid_spec=pltpu.PrefetchScalarGridSpec(
            num_scalar_prefetch=0,
            grid=grid,
            in_specs=in_specs,
            out_specs=out_specs,
            scratch_shapes=scratch_shapes,
        ),
        compiler_params=pltpu.CompilerParams(
            dimension_semantics=dim_sem,
            vmem_limit_bytes=vmem_limit,
        ),
        cost_estimate=cost,
    )(x, w_t)


def foonet_reference(x, weights):
    for l in range(weights.shape[0]):
        x = jnp.maximum(x @ weights[l].T, 0.0)
    return x


if __name__ == "__main__":
    # Module config: neural_num=32, layers=3; batch=2.
    batch, neural_num, layers = 2, 32, 3

    key = jax.random.PRNGKey(0)
    kx, kw = jax.random.split(key)

    # Deterministic synthetic parameters (roughly Linear-scale ~1/sqrt(N)).
    weights = (
        jax.random.normal(kw, (layers, neural_num, neural_num), dtype=jnp.float32)
        / jnp.sqrt(jnp.float32(neural_num))
    )
    x = jax.random.normal(kx, (batch, neural_num), dtype=jnp.float32)

    # NOTE: the PyTorch forward prints the batch size (side effect only);
    # omitted so stdout is exactly "KERNEL_OK".
    out = jax.block_until_ready(foonet_forward(x, weights))
    ref = foonet_reference(x, weights)
    assert out.shape == (batch, neural_num)
    assert jnp.allclose(out, ref, atol=1e-5, rtol=1e-5)

    # Also exercise the streamed-weight path (the one that scales to large N /
    # v7x's 64 MiB VMEM) on a small, aligned shape and check it against the ref.
    b2, n2 = 16, 128
    kx2, kw2 = jax.random.split(jax.random.PRNGKey(0))
    w2 = (
        jax.random.normal(kw2, (layers, n2, n2), dtype=jnp.float32)
        / jnp.sqrt(jnp.float32(n2))
    )
    x2 = jax.random.normal(kx2, (b2, n2), dtype=jnp.float32)
    out2 = jax.block_until_ready(foonet_forward(x2, w2, path="streamed"))
    assert jnp.allclose(out2, foonet_reference(x2, w2), atol=1e-4, rtol=1e-4)

    print("KERNEL_OK")
</pallas_src>

<mosaic_0001>
module attributes {stable_mosaic.version = 11 : i64} {
  func.func @foonet_resident_kernel(%arg0: i32, %arg1: memref<2x32xf32, #tpu.memory_space<vmem>>, %arg2: memref<3x32x32xf32, #tpu.memory_space<vmem>>, %arg3: memref<2x32xf32, #tpu.memory_space<vmem>>) attributes {dimension_semantics = [#tpu.dimension_semantics<parallel>], iteration_bounds = array<i64: 1>, scalar_prefetch = 0 : i64, scratch_operands = 0 : i64, tpu.core_type = #tpu.core_type<tc>, window_params = [{transform_indices = @transform_0, window_bounds = array<i64: 2, 32>}, {pipeline_mode = #tpu.pipeline_mode<synchronous>, transform_indices = @transform_1, window_bounds = array<i64: 3, 32, 32>}, {transform_indices = @transform_2, window_bounds = array<i64: 2, 32>}]} {
    %c0 = arith.constant 0 : index
    %c0_0 = arith.constant 0 : index
    %0 = vector.load %arg1[%c0, %c0_0] : memref<2x32xf32, #tpu.memory_space<vmem>>, vector<2x32xf32>
    %c0_1 = arith.constant 0 : index
    %c0_2 = arith.constant 0 : index
    %c0_3 = arith.constant 0 : index
    %1 = vector.load %arg2[%c0_1, %c0_2, %c0_3] : memref<3x32x32xf32, #tpu.memory_space<vmem>>, vector<1x32x32xf32>
    %2 = vector.shape_cast %1 : vector<1x32x32xf32> to vector<32x32xf32>
    %cst = arith.constant dense<0.000000e+00> : vector<2x32xf32>
    %3 = tpu.matmul %0, %2, %cst {dimension_numbers = #tpu.dot_dimension_numbers<[1], [0], [0], [1], [0, 0, 1, 1], [], []>} : vector<2x32xf32>, vector<32x32xf32>, vector<2x32xf32> -> vector<2x32xf32>
    %cst_4 = arith.constant 0.000000e+00 : f32
    %4 = vector.broadcast %cst_4 : f32 to vector<2x32xf32>
    %5 = arith.maximumf %3, %4 : vector<2x32xf32>
    %c1 = arith.constant 1 : index
    %c0_5 = arith.constant 0 : index
    %c0_6 = arith.constant 0 : index
    %6 = vector.load %arg2[%c1, %c0_5, %c0_6] : memref<3x32x32xf32, #tpu.memory_space<vmem>>, vector<1x32x32xf32>
    %7 = vector.shape_cast %6 : vector<1x32x32xf32> to vector<32x32xf32>
    %cst_7 = arith.constant dense<0.000000e+00> : vector<2x32xf32>
    %8 = tpu.matmul %5, %7, %cst_7 {dimension_numbers = #tpu.dot_dimension_numbers<[1], [0], [0], [1], [0, 0, 1, 1], [], []>} : vector<2x32xf32>, vector<32x32xf32>, vector<2x32xf32> -> vector<2x32xf32>
    %cst_8 = arith.constant 0.000000e+00 : f32
    %9 = vector.broadcast %cst_8 : f32 to vector<2x32xf32>
    %10 = arith.maximumf %8, %9 : vector<2x32xf32>
    %c2 = arith.constant 2 : index
    %c0_9 = arith.constant 0 : index
    %c0_10 = arith.constant 0 : index
    %11 = vector.load %arg2[%c2, %c0_9, %c0_10] : memref<3x32x32xf32, #tpu.memory_space<vmem>>, vector<1x32x32xf32>
    %12 = vector.shape_cast %11 : vector<1x32x32xf32> to vector<32x32xf32>
    %cst_11 = arith.constant dense<0.000000e+00> : vector<2x32xf32>
    %13 = tpu.matmul %10, %12, %cst_11 {dimension_numbers = #tpu.dot_dimension_numbers<[1], [0], [0], [1], [0, 0, 1, 1], [], []>} : vector<2x32xf32>, vector<32x32xf32>, vector<2x32xf32> -> vector<2x32xf32>
    %cst_12 = arith.constant 0.000000e+00 : f32
    %14 = vector.broadcast %cst_12 : f32 to vector<2x32xf32>
    %15 = arith.maximumf %13, %14 : vector<2x32xf32>
    %c0_13 = arith.constant 0 : index
    %c0_14 = arith.constant 0 : index
    %16 = vector.load %arg3[%c0_13, %c0_14] : memref<2x32xf32, #tpu.memory_space<vmem>>, vector<2x32xf32>
    tpu.vector_store %arg3[%c0_13, %c0_14], %15 {strides = array<i32>} : memref<2x32xf32, #tpu.memory_space<vmem>>, vector<2x32xf32>,
    return
  }
  func.func @transform_0(%arg0: i32) -> (i32, i32) {
    %c0_i32 = arith.constant 0 : i32
    %c0_i32_0 = arith.constant 0 : i32
    return %arg0, %c0_i32 : i32, i32
  }
  func.func @transform_1(%arg0: i32) -> (i32, i32, i32) {
    %c0_i32 = arith.constant 0 : i32
    %c0_i32_0 = arith.constant 0 : i32
    %c0_i32_1 = arith.constant 0 : i32
    %c0_i32_2 = arith.constant 0 : i32
    return %c0_i32, %c0_i32_0, %c0_i32_1 : i32, i32, i32
  }
  func.func @transform_2(%arg0: i32) -> (i32, i32) {
    %c0_i32 = arith.constant 0 : i32
    %c0_i32_0 = arith.constant 0 : i32
    return %arg0, %c0_i32 : i32, i32
  }
}

</mosaic_0001>

<bundles_post_ra>
// kernel: tpu_custom_call.1
= control target key start
LH: loop header
LB: loop body
LE: loop exit
PB: predicated region body
PF: predicated region fallthrough
CT: control target
= control target key end

     0   :  { %7 = vsyncpa [#allocation3], 0  ;;  %s515_s0 = inlined_call_operand.hbm [shape: f32[2,32], index: 0, kind: input, shape index: {}]   ;;  %s516_s1 = inlined_call_operand.hbm [shape: f32[3,32,32], index: 1, kind: input, shape index: {}]   ;;  %s517_s2 = inlined_call_operand.hbm [shape: f32[2,32], index: 2, kind: output, shape index: {}]  }
   0x1   :  { %8 = vsyncpa [#allocation6], 0 }
   0x2   :  { %9 = vsyncpa [#allocation4], 0  ;;  %s443_s9 = smov [#allocation2]   ;;  %s444_s11 = smov [#allocation5]  }
   0x3   :  { %s16_s10 = sshll.u32 %s443_s9, 4  ;;  %s25_s12 = sshll.u32 %s444_s11, 4  ;;  %s17_s10 = int_to_ptr.vmem [resolvable:$true] %s16_s10  ;;  %s466_s12 = int_to_ptr.vmem [resolvable:$true] %s25_s12 }
   0x4   :  { %s371_s15 = scalar_lea.hbm %s515_s0, 32 }
   0x5   :  { %p372_p0 = scmp.ne.s32.totalorder %s515_s0, %s371_s15  ;;  %p375_p1 = scmp.lt.u32.totalorder %s371_s15, %s515_s0 }
   0x7   :  { %p377_p2 = pnand %p375_p1, %p372_p0 }
   0x9   :  { %380 = shalt.err (!%p377_p2)
}
   0xa   :  { %s381_s20 = scalar_lea.vmem %s17_s10, 32  ;;  %p386_p4 = scmp.lt.s32.totalorder %s17_s10, %s17_s10 }
   0xb   :  { %p382_p3 = scmp.ne.s32.totalorder %s17_s10, %s381_s20  ;;  %p387_p5 = scmp.lt.s32.totalorder %s381_s20, %s381_s20 }
   0xd   :  { %p388_p6 = por %p387_p5, %p386_p4 }
   0xf   :  { %p389_p7 = pnand %p388_p6, %p382_p3 }
  0x11   :  { %392 = shalt.err (!%p389_p7)
}
  0x12   :  { %19 = dma.hbm_to_vmem [thread:$0]  %s515_s0, 32, %s17_s10, [#allocation3]  }
  0x13   :  { %s393_s25 = scalar_lea.hbm %s516_s1, 1536 }
  0x14   :  { %p394_p8 = scmp.ne.s32.totalorder %s516_s1, %s393_s25  ;;  %p397_p9 = scmp.lt.u32.totalorder %s393_s25, %s516_s1 }
  0x16   :  { %p399_p10 = pnand %p397_p9, %p394_p8 }
  0x18   :  { %402 = shalt.err (!%p399_p10)
}
  0x19   :  { %s403_s30 = scalar_lea.vmem %s466_s12, 1536  ;;  %p408_p12 = scmp.lt.s32.totalorder %s466_s12, %s466_s12 }
  0x1a   :  { %p404_p11 = scmp.ne.s32.totalorder %s466_s12, %s403_s30  ;;  %p409_p13 = scmp.lt.s32.totalorder %s403_s30, %s403_s30 }
  0x1c   :  { %p410_p0 = por %p409_p13, %p408_p12 }
  0x1e   :  { %p411_p1 = pnand %p410_p0, %p404_p11 }
  0x20   :  { %414 = shalt.err (!%p411_p1)
}
  0x21   :  { %s445_s0 = smov 128   ;;  %s446_s3 = smov 8  }
  0x22   :  { %31 = dma.hbm_to_vmem [thread:$0]  %s516_s1, 1536, %s466_s12, [#allocation6], %s445_s0, %s445_s0, %s446_s3  }
  0x23   :  { %437 = dma.done.wait [#allocation3], 32  }
  0x24   :  { %438 = vsyncadd [#allocation3], 4294967264 }
  0x25   :  { %439 = dma.done.wait [#allocation6], 1536  }
  0x26   :  { %440 = vsyncadd [#allocation6], 4294965760  ;;  %v447_v0 = vmov 0.0|0.0   ;;  %vm448_vm0 = vmmov 0   ;;  %v449_v1 = vmov 0.0   ;;  %v39_v2 = vld [vmem:[#allocation5] sm:$0xff] }
  0x27   :  { %345 = vmatprep.subr.bf16.mxu0 %v447_v0  ;;  %320 = vmatprep.mubr.msk.f32.mxu0 %vm448_vm0, %v449_v1  ;;  %v40_v3 = vld [vmem:[#allocation5 + $0x8] sm:$0xff]  ;;  %v41_v4 = vld [vmem:[#allocation5 + $0x10] sm:$0xff]  ;;  %v42_v6 = vld [vmem:[#allocation5 + $0x18] sm:$0xff]  ;;  %vm43_vm1 = vcmask 261120   ;;  %s450_s1 = smov [#allocation7]   ;;  %vm276_vm2 = vcmask 254976  }
  0x28   :  { %351 = vmatprep.subr.bf16.mxu1 %v447_v0  ;;  %331 = vmatprep.mubr.msk.f32.mxu1 %vm448_vm0, %v449_v1  ;;  %v346_v5 = vpack.c.bf16 %v40_v3, %v39_v2  ;;  %v119_v7 = vld [vmem:[#allocation5 + $0x20] sm:$0xff]  ;;  %v120_v8 = vld [vmem:[#allocation5 + $0x28] sm:$0xff]  ;;  %v349_v9 = vpack.c.bf16 %v42_v6, %v41_v4  ;;  %v38_v11 = vld [vmem:[#allocation2] sm:$0x3]  ;;  %s284_s6 = sshll.u32 %s450_s1, 4  ;;  %s285_s6 = int_to_ptr.vmem [resolvable:$true] %s284_s6 }
  0x29   :  { %v352_v10 = vpack.c.bf16 %v120_v8, %v119_v7  ;;  %v121_v12 = vld [vmem:[#allocation5 + $0x30] sm:$0xff]  ;;  %v122_v13 = vld [vmem:[#allocation5 + $0x38] sm:$0xff]  ;;  %v198_v15 = vld [vmem:[#allocation5 + $0x40] sm:$0xff]  ;;  %s415_s7 = scalar_lea.vmem %s285_s6, 32  ;;  %p420_p3 = scmp.lt.s32.totalorder %s285_s6, %s285_s6 }
  0x2a   :  { %347 = vmatpush3.bf16.msra.mxu0 %v346_v5  ;;  %v355_v14 = vpack.c.bf16 %v122_v13, %v121_v12  ;;  %v199_v16 = vld [vmem:[#allocation5 + $0x48] sm:$0xff]  ;;  %v200_v21 = vld [vmem:[#allocation5 + $0x50] sm:$0xff]  ;;  %v201_v22 = vld [vmem:[#allocation5 + $0x58] sm:$0xff]  ;;  %p416_p2 = scmp.ne.s32.totalorder %s285_s6, %s415_s7  ;;  %p421_p4 = scmp.lt.s32.totalorder %s415_s7, %s415_s7 }
  0x2b   :  { %348 = vmatprep.subr.bf16.mxu0 %v447_v0  ;;  %353 = vmatpush3.bf16.msra.mxu1 %v352_v10  ;;  %v358_v17 = vpack.c.bf16 %v199_v16, %v198_v15  ;;  %v361_v23 = vpack.c.bf16 %v201_v22, %v200_v21 }
  0x2c   :  { %354 = vmatprep.subr.bf16.mxu1 %v447_v0  ;;  %p422_p5 = por %p421_p4, %p420_p3 }
  0x2e   :  { %350 = vmatpush3.bf16.msra.mxu0 %v349_v9  ;;  %p423_p6 = pnand %p422_p5, %p416_p2 }
  0x2f   :  { %357 = vmatprep.subr.bf16.mxu0 %v447_v0  ;;  %356 = vmatpush3.bf16.msra.mxu1 %v355_v14 }
  0x31   :  { %321 = vmatmul.mubr.msk.f32.vlgmr.msra.gmra.mrb[0].mxu0 %vm43_vm1, %v38_v11 }
  0x32   :  { %342 = vmatprep.mubr.msk.f32.mxu0 %vm448_vm0, %v449_v1  ;;  %359 = vmatpush3.bf16.msra.mxu0 %v358_v17 }
  0x33   :  { %360 = vmatprep.subr.bf16.mxu0 %v447_v0 }
  0x36   :  { %362 = vmatpush3.bf16.msra.mxu0 %v361_v23 }
 0x104   :  { %v113_v18 = vpop.f32.mrb[0].mxu0 }
 0x105   :  { %v117_v19 = vmax.f32 %v113_v18, 0.0  ;;  %v322_v20 = vpop.f32.mrb[1].mxu0 }
 0x107   :  { %332 = vmatmul.mubr.msk.f32.vlgmr.msra.gmra.mrb[0].mxu1 %vm43_vm1, %v117_v19 }
 0x1da   :  { %v192_v24 = vpop.f32.mrb[0].mxu1 }
 0x1db   :  { %v196_v25 = vmax.f32 %v192_v24, 0.0  ;;  %v333_v26 = vpop.f32.mrb[1].mxu1 }
 0x1dd   :  { %343 = vmatmul.mubr.msk.f32.vlgmr.msra.gmra.mrb[2].mxu0 %vm43_vm1, %v196_v25 }
 0x2b0   :  { %v271_v27 = vpop.f32.mrb[2].mxu0 }
 0x2b1   :  { %v275_v28 = vmax.f32 %v271_v27, 0.0  ;;  %v344_v29 = vpop.f32.mrb[3].mxu0 }
 0x2b3   :  { %277 = vst.msk [vmem:[#allocation7] sm:$0x3] %vm276_vm2, %v275_v28 }
 0x2b4   :  { %426 = shalt.err (!%p423_p6)
}
 0x2b5   :  { %s427_s10 = scalar_lea.hbm %s517_s2, 32 }
 0x2b6   :  { %p428_p7 = scmp.ne.s32.totalorder %s517_s2, %s427_s10  ;;  %p431_p8 = scmp.lt.u32.totalorder %s427_s10, %s517_s2 }
 0x2b8   :  { %p433_p9 = pnand %p431_p8, %p428_p7 }
 0x2ba   :  { %436 = shalt.err (!%p433_p9)
}
 0x2bb   :  { %287 = dma.vmem_to_hbm [thread:$0]  %s285_s6, 32, %s517_s2, [#allocation4]  }
 0x2bc   :  { %441 = dma.done.wait [#allocation4], 32  }
 0x2bd   :  { %442 = vsyncadd [#allocation4], 4294967264 }
 0x2be   :  { %291 = vsyncpa [#allocation3], 1 }
 0x2bf   :  { %292 = vsyncpa [#allocation6], 1 }
 0x2c0   :  { %293 = vsyncpa [#allocation4], 1 }

</bundles_post_ra>
